<compile_context>
chip_gen: v6e
topology: v6e:2x2x1
jax: 0.10.0
libtpu: 0.0.40
codegen_flags: <defaults>
</compile_context>

<pallas_src>
import functools

import jax
import jax.numpy as jnp
import numpy as np
from jax.experimental import pallas as pl
from jax.experimental.pallas import tpu as pltpu


# ----------------------------- config ---------------------------------------
class Config:
    in_channels = 1
    out_channels = 32
    kernel_heights = (3, 4, 5)
    stride = 1
    padding = 0
    embedding_size = 128
    dropout = 0.0  # inference


MAX_LEN = 16
BATCH = 2
LANES = 128


# ----------------------------- kernel ---------------------------------------
def cnn_encoder_kernel(x_ref, w_ref, bconv_ref, wf_ref, bf_ref, out_ref, *,
                       kernel_heights, max_len, batch_tile, out_channels):
    """Fused text-CNN forward for one batch tile.

    x_ref     : [TB*L, E]        f32, batch-major rows (row = b*L + t)
    w_ref     : [E, max_kh*128]  bf16, shift-major lane-aligned slabs
    bconv_ref : [1, 128]         f32 conv biases (branch-major lanes, 0-padded)
    wf_ref    : [128, C]         bf16 final linear weight (rows >= 3C are zero)
    bf_ref    : [1, C]           f32 final linear bias
    out_ref   : [TB, C]          f32
    """
    L, TB, C = max_len, batch_tile, out_channels
    max_kh = max(kernel_heights)
    n_rows = TB * L

    # bf16 cast happens here, in VMEM (activations stay f32 in HBM). [review #3]
    x = x_ref[...]                                              # [TB*L, E] f32
    # A few zero rows keep every shifted row slice below in bounds.
    x = jnp.concatenate(
        [x, jnp.zeros((max_kh - 1, x.shape[1]), x.dtype)], axis=0)
    x = x.astype(jnp.bfloat16)

    # ONE lane-dense MXU push (bf16 in, f32 accumulate) for all branches and
    # all shifts; the zero-padded extra columns are free at this M.
    y = jnp.dot(x, w_ref[...], preferred_element_type=jnp.float32)

    # Shift-and-add: conv output at time t is sum_j y[row + j, slab_j].  Each
    # slab is a full 128-lane slice (no sub-vreg lane selects).      [review #4]
    # Rows that run past a sequence end pick up neighbouring-sequence / pad
    # garbage, but only at time positions that are masked before the pool.
    # TODO(synk): pltpu.roll would co-issue these row shifts on the XLU; with
    # a time-major layout and B % 8 == 0 they become (8,128)-tile aligned.
    acc = y[0:n_rows, 0:LANES]
    for j in range(1, max_kh):
        acc = acc + y[j:j + n_rows, j * LANES:(j + 1) * LANES]

    # Single hoisted validity mask: lane c belongs to branch c // C and is
    # valid while t < l_out(branch).  Padding lanes (>= 3C) carry exact zeros
    # (their weight columns are zero) and stay "valid", pooling to 0. [review #6]
    t_idx = jax.lax.broadcasted_iota(jnp.int32, (L, LANES), 0)
    lane = jax.lax.broadcasted_iota(jnp.int32, (L, LANES), 1)
    lout = jnp.full((L, LANES), L, jnp.int32)
    for f, kh in enumerate(kernel_heights):
        sel = (lane >= f * C) & (lane < (f + 1) * C)
        lout = jnp.where(sel, L - kh + 1, lout)
    valid = t_idx < lout                                        # [L, 128]

    # Per-sequence max over time: rows of sequence b are the 8-aligned
    # contiguous segment [b*L, (b+1)*L) -- no per-batch masks needed.
    neg = jnp.float32(-1e30)
    pooled = jnp.concatenate(
        [jnp.max(jnp.where(valid, acc[b * L:(b + 1) * L, :], neg),
                 axis=0, keepdims=True)
         for b in range(TB)], axis=0)                           # [TB, 128]

    # Conv bias + ReLU AFTER the pool (valid: channel-constant bias, monotone
    # ReLU).  The features stay one dense 128-lane slab into the head matmul.
    z = jnp.maximum(pooled + bconv_ref[...], 0.0)

    # TODO(synk): nn.Dropout treated as inference-mode identity (no RNG mask).
    # Final linear in bf16 on the MXU, f32 accumulate.              [review #7]
    out = jnp.dot(z.astype(jnp.bfloat16), wf_ref[...],
                  preferred_element_type=jnp.float32) + bf_ref[...]
    out_ref[...] = jnp.maximum(out, 0.0)


# ----------------------------- parameter prep (done once) --------------------
def prepare_params(params, config):
    """One-time weight repack, hoisted out of the forward path.

    Conv weights [C,1,kh,E] are packed shift-major into W_pad [E, max_kh*128]:
    slab j holds the shift-j weight columns of every branch whose kh > j at
    lanes [branch*C, (branch+1)*C); all other lanes are zero, so both the
    shift-and-add and the pool operate on full 128-lane slabs.
    """
    E = config.embedding_size
    C = config.out_channels
    khs = tuple(config.kernel_heights)
    max_kh = max(khs)
    assert len(khs) * C <= LANES

    w_pad = np.zeros((E, max_kh * LANES), np.float32)
    b_pad = np.zeros((1, LANES), np.float32)
    for f, (w, b_) in enumerate(params["convs"]):
        w = np.asarray(w, np.float32)                      # [C, 1, kh, E]
        kh = w.shape[2]
        for j in range(kh):
            w_pad[:, j * LANES + f * C:j * LANES + (f + 1) * C] = w[:, 0, j, :].T
        b_pad[0, f * C:(f + 1) * C] = np.asarray(b_, np.float32)

    wf_pad = np.zeros((LANES, C), np.float32)
    wf_pad[:len(khs) * C, :] = np.asarray(params["linear_w"], np.float32).T
    bf = np.asarray(params["linear_b"], np.float32).reshape(1, C)

    return (jnp.asarray(w_pad, dtype=jnp.bfloat16),
            jnp.asarray(b_pad, dtype=jnp.float32),
            jnp.asarray(wf_pad, dtype=jnp.bfloat16),
            jnp.asarray(bf, dtype=jnp.float32))


# ----------------------------- wrapper ---------------------------------------
def _pick_batch_tile(batch, max_len, target_rows=2048):
    """Rows per grid step.  ~2K rows keeps the f32 `y` intermediate
    (~2.5 KB/row at max_kh*128 cols) + double-buffered inputs well inside the
    default scoped VMEM on every generation (incl. v7x's 64 MiB).   [review #9]
    """
    if batch * max_len <= target_rows:
        return batch                       # one grid step, no per-step overhead
    tb = max(8, (target_rows // max_len) // 8 * 8)
    while tb >= 8 and batch % tb:
        tb -= 8
    return tb if tb >= 8 and batch % tb == 0 else batch


def cnn_encoder_forward(embedded, prepared, config):
    """embedded: [max_len, batch, embedding_size] (same layout as the PyTorch module)."""
    L, B, E = embedded.shape
    C = config.out_channels
    khs = tuple(config.kernel_heights)
    max_kh = max(khs)
    assert L % 8 == 0, "pad max_len to a multiple of 8"
    w_pad, bconv, wf, bf = prepared

    # Batch-major activation rows (row = b*L + t).  The transpose is one tiny
    # XLA op; the bf16 cast happens inside the kernel.              [review #3]
    # TODO(synk): emit batch-major embeddings upstream to drop this pass.
    x = jnp.transpose(embedded, (1, 0, 2)).reshape(B * L, E)

    TB = _pick_batch_tile(B, L)
    grid = (B // TB,)

    kernel = functools.partial(cnn_encoder_kernel,
                               kernel_heights=khs, max_len=L,
                               batch_tile=TB, out_channels=C)

    return pl.pallas_call(
        kernel,
        out_shape=jax.ShapeDtypeStruct((B, C), jnp.float32),
        grid=grid,
        in_specs=[
            pl.BlockSpec((TB * L, E), lambda i: (i, 0)),        # activations
            pl.BlockSpec((E, max_kh * LANES), lambda i: (0, 0)),  # packed conv W
            pl.BlockSpec((1, LANES), lambda i: (0, 0)),          # conv bias
            pl.BlockSpec((LANES, C), lambda i: (0, 0)),          # final W
            pl.BlockSpec((1, C), lambda i: (0, 0)),              # final bias
        ],
        out_specs=pl.BlockSpec((TB, C), lambda i: (i, 0)),
        # Independent batch tiles -> shard across TensorCores on v7x. [review #2]
        compiler_params=pltpu.CompilerParams(
            dimension_semantics=("parallel",)),
    )(x, w_pad, bconv, wf, bf)


# ----------------------------- reference (pure JAX) ---------------------------
def reference_forward(embedded, params, config, matmul_dtype=jnp.float32):
    """Pure-JAX equivalent of the PyTorch module (dropout = inference identity).

    matmul_dtype controls the matmul-input precision so the kernel's
    bf16-in / f32-accumulate numerics can be mimicked for a tight check.
    """
    x = jnp.transpose(embedded, (1, 0, 2))[:, None, :, :]          # [B,1,L,E]
    pooled = []
    for (w, b_) in params["convs"]:
        conv = jax.lax.conv_general_dilated(
            x.astype(matmul_dtype), w.astype(matmul_dtype),
            window_strides=(1, 1), padding="VALID",
            dimension_numbers=("NCHW", "OIHW", "NCHW"),
            preferred_element_type=jnp.float32,
            precision=jax.lax.Precision.HIGHEST)                   # [B,C,L_out,1]
        act = jax.nn.relu(conv[..., 0] + b_[None, :, None])
        pooled.append(jnp.max(act, axis=2))                        # [B, C]
    cat = jnp.concatenate(pooled, axis=1)                          # [B, 3C]
    y = jnp.dot(cat.astype(matmul_dtype),
                params["linear_w"].T.astype(matmul_dtype),
                preferred_element_type=jnp.float32,
                precision=jax.lax.Precision.HIGHEST) + params["linear_b"]
    return jax.nn.relu(y)


# ----------------------------- main -------------------------------------------
if __name__ == "__main__":
    cfg = Config()
    L, B, E, C = MAX_LEN, BATCH, cfg.embedding_size, cfg.out_channels
    khs = cfg.kernel_heights

    key = jax.random.PRNGKey(0)
    keys = jax.random.split(key, 10)

    # Deterministic synthetic parameters (shapes match nn.Conv2d / nn.Linear).
    params = {
        "convs": [
            (0.1 * jax.random.normal(keys[1], (C, cfg.in_channels, khs[0], E), jnp.float32),
             0.1 * jax.random.normal(keys[2], (C,), jnp.float32)),
            (0.1 * jax.random.normal(keys[3], (C, cfg.in_channels, khs[1], E), jnp.float32),
             0.1 * jax.random.normal(keys[4], (C,), jnp.float32)),
            (0.1 * jax.random.normal(keys[5], (C, cfg.in_channels, khs[2], E), jnp.float32),
             0.1 * jax.random.normal(keys[6], (C,), jnp.float32)),
        ],
        "linear_w": 0.1 * jax.random.normal(keys[7], (C, len(khs) * C), jnp.float32),
        "linear_b": 0.1 * jax.random.normal(keys[8], (C,), jnp.float32),
    }

    embedded = jax.random.normal(keys[0], (L, B, E), jnp.float32)

    prepared = prepare_params(params, cfg)
    out = jax.block_until_ready(cnn_encoder_forward(embedded, prepared, cfg))

    # Tight check vs. a reference mimicking the kernel's bf16-in / f32-acc numerics.
    ref_bf16 = jax.block_until_ready(
        reference_forward(embedded, params, cfg, matmul_dtype=jnp.bfloat16))
    np.testing.assert_allclose(np.asarray(out), np.asarray(ref_bf16),
                               rtol=5e-3, atol=5e-3)

    # Sanity check vs. the pure-f32 PyTorch-equivalent reference (tolerance
    # accounts for bf16 quantization of the matmul inputs on the MXU).
    ref_f32 = jax.block_until_ready(reference_forward(embedded, params, cfg))
    np.testing.assert_allclose(np.asarray(out), np.asarray(ref_f32),
                               rtol=5e-2, atol=1e-1)

    print("KERNEL_OK")
</pallas_src>

<mosaic_0001>
module attributes {stable_mosaic.version = 11 : i64} {
  func.func @cnn_encoder_kernel(%arg0: i32, %arg1: memref<32x128xf32, #tpu.memory_space<vmem>>, %arg2: memref<128x640xbf16, #tpu.memory_space<vmem>>, %arg3: memref<1x128xf32, #tpu.memory_space<vmem>>, %arg4: memref<128x32xbf16, #tpu.memory_space<vmem>>, %arg5: memref<1x32xf32, #tpu.memory_space<vmem>>, %arg6: memref<2x32xf32, #tpu.memory_space<vmem>>) attributes {dimension_semantics = [#tpu.dimension_semantics<parallel>], iteration_bounds = array<i64: 1>, scalar_prefetch = 0 : i64, scratch_operands = 0 : i64, tpu.core_type = #tpu.core_type<tc>, window_params = [{transform_indices = @transform_0, window_bounds = array<i64: 32, 128>}, {pipeline_mode = #tpu.pipeline_mode<synchronous>, transform_indices = @transform_1, window_bounds = array<i64: 128, 640>}, {pipeline_mode = #tpu.pipeline_mode<synchronous>, transform_indices = @transform_2, window_bounds = array<i64: 1, 128>}, {pipeline_mode = #tpu.pipeline_mode<synchronous>, transform_indices = @transform_3, window_bounds = array<i64: 128, 32>}, {pipeline_mode = #tpu.pipeline_mode<synchronous>, transform_indices = @transform_4, window_bounds = array<i64: 1, 32>}, {transform_indices = @transform_5, window_bounds = array<i64: 2, 32>}]} {
    %c0 = arith.constant 0 : index
    %c0_0 = arith.constant 0 : index
    %0 = vector.load %arg1[%c0, %c0_0] : memref<32x128xf32, #tpu.memory_space<vmem>>, vector<32x128xf32>
    %cst = arith.constant 0.000000e+00 : f32
    %1 = vector.broadcast %cst : f32 to vector<4x128xf32>
    %2 = tpu.concatenate %0, %1 in 0 : vector<32x128xf32>, vector<4x128xf32> -> vector<36x128xf32>
    %3 = arith.truncf %2 : vector<36x128xf32> to vector<36x128xbf16>
    %c0_1 = arith.constant 0 : index
    %c0_2 = arith.constant 0 : index
    %4 = vector.load %arg2[%c0_1, %c0_2] : memref<128x640xbf16, #tpu.memory_space<vmem>>, vector<128x640xbf16>
    %cst_3 = arith.constant dense<0.000000e+00> : vector<36x640xf32>
    %5 = tpu.matmul %3, %4, %cst_3 {dimension_numbers = #tpu.dot_dimension_numbers<[1], [0], [0], [1], [0, 0, 1, 1], [], []>} : vector<36x128xbf16>, vector<128x640xbf16>, vector<36x640xf32> -> vector<36x640xf32>
    %6 = vector.extract_strided_slice %5 {offsets = [0, 0], sizes = [32, 128], strides = [1, 1]} : vector<36x640xf32> to vector<32x128xf32>
    %7 = vector.extract_strided_slice %5 {offsets = [1, 128], sizes = [32, 128], strides = [1, 1]} : vector<36x640xf32> to vector<32x128xf32>
    %8 = arith.addf %6, %7 : vector<32x128xf32>
    %9 = vector.extract_strided_slice %5 {offsets = [2, 256], sizes = [32, 128], strides = [1, 1]} : vector<36x640xf32> to vector<32x128xf32>
    %10 = arith.addf %8, %9 : vector<32x128xf32>
    %11 = vector.extract_strided_slice %5 {offsets = [3, 384], sizes = [32, 128], strides = [1, 1]} : vector<36x640xf32> to vector<32x128xf32>
    %12 = arith.addf %10, %11 : vector<32x128xf32>
    %13 = vector.extract_strided_slice %5 {offsets = [4, 512], sizes = [32, 128], strides = [1, 1]} : vector<36x640xf32> to vector<32x128xf32>
    %14 = arith.addf %12, %13 : vector<32x128xf32>
    %15 = tpu.iota {dimensions = array<i32: 0>} : vector<16x128xi32>
    %16 = tpu.iota {dimensions = array<i32: 1>} : vector<16x128xi32>
    %c16_i32 = arith.constant 16 : i32
    %17 = vector.broadcast %c16_i32 : i32 to vector<16x128xi32>
    %c0_i32 = arith.constant 0 : i32
    %18 = vector.broadcast %c0_i32 : i32 to vector<16x128xi32>
    %19 = arith.cmpi sge, %16, %18 : vector<16x128xi32>
    %c32_i32 = arith.constant 32 : i32
    %20 = vector.broadcast %c32_i32 : i32 to vector<16x128xi32>
    %21 = arith.cmpi slt, %16, %20 : vector<16x128xi32>
    %22 = arith.andi %19, %21 : vector<16x128xi1>
    %c14_i32 = arith.constant 14 : i32
    %23 = vector.broadcast %c14_i32 : i32 to vector<16x128xi32>
    %24 = arith.select %22, %23, %17 : vector<16x128xi1>, vector<16x128xi32>
    %c32_i32_4 = arith.constant 32 : i32
    %25 = vector.broadcast %c32_i32_4 : i32 to vector<16x128xi32>
    %26 = arith.cmpi sge, %16, %25 : vector<16x128xi32>
    %c64_i32 = arith.constant 64 : i32
    %27 = vector.broadcast %c64_i32 : i32 to vector<16x128xi32>
    %28 = arith.cmpi slt, %16, %27 : vector<16x128xi32>
    %29 = arith.andi %26, %28 : vector<16x128xi1>
    %c13_i32 = arith.constant 13 : i32
    %30 = vector.broadcast %c13_i32 : i32 to vector<16x128xi32>
    %31 = arith.select %29, %30, %24 : vector<16x128xi1>, vector<16x128xi32>
    %c64_i32_5 = arith.constant 64 : i32
    %32 = vector.broadcast %c64_i32_5 : i32 to vector<16x128xi32>
    %33 = arith.cmpi sge, %16, %32 : vector<16x128xi32>
    %c96_i32 = arith.constant 96 : i32
    %34 = vector.broadcast %c96_i32 : i32 to vector<16x128xi32>
    %35 = arith.cmpi slt, %16, %34 : vector<16x128xi32>
    %36 = arith.andi %33, %35 : vector<16x128xi1>
    %c12_i32 = arith.constant 12 : i32
    %37 = vector.broadcast %c12_i32 : i32 to vector<16x128xi32>
    %38 = arith.select %36, %37, %31 : vector<16x128xi1>, vector<16x128xi32>
    %39 = arith.cmpi slt, %15, %38 : vector<16x128xi32>
    %40 = vector.extract_strided_slice %14 {offsets = [0, 0], sizes = [16, 128], strides = [1, 1]} : vector<32x128xf32> to vector<16x128xf32>
    %cst_6 = arith.constant -1.000000e+30 : f32
    %41 = vector.broadcast %cst_6 : f32 to vector<16x128xf32>
    %42 = arith.select %39, %40, %41 : vector<16x128xi1>, vector<16x128xf32>
    %cst_7 = arith.constant dense<0xFF800000> : vector<128xf32>
    %43 = vector.multi_reduction <maximumf>, %42, %cst_7 [0] : vector<16x128xf32> to vector<128xf32>
    %44 = vector.shape_cast %43 : vector<128xf32> to vector<1x128xf32>
    %45 = vector.extract_strided_slice %14 {offsets = [16, 0], sizes = [16, 128], strides = [1, 1]} : vector<32x128xf32> to vector<16x128xf32>
    %cst_8 = arith.constant -1.000000e+30 : f32
    %46 = vector.broadcast %cst_8 : f32 to vector<16x128xf32>
    %47 = arith.select %39, %45, %46 : vector<16x128xi1>, vector<16x128xf32>
    %cst_9 = arith.constant dense<0xFF800000> : vector<128xf32>
    %48 = vector.multi_reduction <maximumf>, %47, %cst_9 [0] : vector<16x128xf32> to vector<128xf32>
    %49 = vector.shape_cast %48 : vector<128xf32> to vector<1x128xf32>
    %50 = tpu.concatenate %44, %49 in 0 : vector<1x128xf32>, vector<1x128xf32> -> vector<2x128xf32>
    %c0_10 = arith.constant 0 : index
    %c0_11 = arith.constant 0 : index
    %51 = vector.load %arg3[%c0_10, %c0_11] : memref<1x128xf32, #tpu.memory_space<vmem>>, vector<1x128xf32>
    %52 = vector.broadcast %51 : vector<1x128xf32> to vector<2x128xf32>
    %53 = arith.addf %50, %52 : vector<2x128xf32>
    %cst_12 = arith.constant 0.000000e+00 : f32
    %54 = vector.broadcast %cst_12 : f32 to vector<2x128xf32>
    %55 = arith.maximumf %53, %54 : vector<2x128xf32>
    %56 = arith.truncf %55 : vector<2x128xf32> to vector<2x128xbf16>
    %c0_13 = arith.constant 0 : index
    %c0_14 = arith.constant 0 : index
    %57 = vector.load %arg4[%c0_13, %c0_14] : memref<128x32xbf16, #tpu.memory_space<vmem>>, vector<128x32xbf16>
    %cst_15 = arith.constant dense<0.000000e+00> : vector<2x32xf32>
    %58 = tpu.matmul %56, %57, %cst_15 {dimension_numbers = #tpu.dot_dimension_numbers<[1], [0], [0], [1], [0, 0, 1, 1], [], []>} : vector<2x128xbf16>, vector<128x32xbf16>, vector<2x32xf32> -> vector<2x32xf32>
    %c0_16 = arith.constant 0 : index
    %c0_17 = arith.constant 0 : index
    %59 = vector.load %arg5[%c0_16, %c0_17] : memref<1x32xf32, #tpu.memory_space<vmem>>, vector<1x32xf32>
    %60 = vector.broadcast %59 : vector<1x32xf32> to vector<2x32xf32>
    %61 = arith.addf %58, %60 : vector<2x32xf32>
    %cst_18 = arith.constant 0.000000e+00 : f32
    %62 = vector.broadcast %cst_18 : f32 to vector<2x32xf32>
    %63 = arith.maximumf %61, %62 : vector<2x32xf32>
    %c0_19 = arith.constant 0 : index
    %c0_20 = arith.constant 0 : index
    %64 = vector.load %arg6[%c0_19, %c0_20] : memref<2x32xf32, #tpu.memory_space<vmem>>, vector<2x32xf32>
    tpu.vector_store %arg6[%c0_19, %c0_20], %63 {strides = array<i32>} : memref<2x32xf32, #tpu.memory_space<vmem>>, vector<2x32xf32>,
    return
  }
  func.func @transform_0(%arg0: i32) -> (i32, i32) {
    %c0_i32 = arith.constant 0 : i32
    %c0_i32_0 = arith.constant 0 : i32
    return %arg0, %c0_i32 : i32, i32
  }
  func.func @transform_1(%arg0: i32) -> (i32, i32) {
    %c0_i32 = arith.constant 0 : i32
    %c0_i32_0 = arith.constant 0 : i32
    %c0_i32_1 = arith.constant 0 : i32
    return %c0_i32, %c0_i32_0 : i32, i32
  }
  func.func @transform_2(%arg0: i32) -> (i32, i32) {
    %c0_i32 = arith.constant 0 : i32
    %c0_i32_0 = arith.constant 0 : i32
    %c0_i32_1 = arith.constant 0 : i32
    return %c0_i32, %c0_i32_0 : i32, i32
  }
  func.func @transform_3(%arg0: i32) -> (i32, i32) {
    %c0_i32 = arith.constant 0 : i32
    %c0_i32_0 = arith.constant 0 : i32
    %c0_i32_1 = arith.constant 0 : i32
    return %c0_i32, %c0_i32_0 : i32, i32
  }
  func.func @transform_4(%arg0: i32) -> (i32, i32) {
    %c0_i32 = arith.constant 0 : i32
    %c0_i32_0 = arith.constant 0 : i32
    %c0_i32_1 = arith.constant 0 : i32
    return %c0_i32, %c0_i32_0 : i32, i32
  }
  func.func @transform_5(%arg0: i32) -> (i32, i32) {
    %c0_i32 = arith.constant 0 : i32
    %c0_i32_0 = arith.constant 0 : i32
    return %arg0, %c0_i32 : i32, i32
  }
}

</mosaic_0001>

<bundles_post_ra>
// kernel: tpu_custom_call.1
= control target key start
LH: loop header
LB: loop body
LE: loop exit
PB: predicated region body
PF: predicated region fallthrough
CT: control target
= control target key end

     0   :  { %10 = vsyncpa [#allocation3], 0  ;;  %s1149_s0 = inlined_call_operand.vmem [shape: f32[32,128], index: 0, kind: input, shape index: {}]   ;;  %s1150_s1 = inlined_call_operand.hbm [shape: bf16[128,640], index: 1, kind: input, shape index: {}]   ;;  %s1151_s2 = inlined_call_operand.vmem [shape: f32[1,128], index: 2, kind: input, shape index: {}]   ;;  %s1152_s3 = inlined_call_operand.vmem [shape: bf16[128,32], index: 3, kind: input, shape index: {}]   ;;  %s1153_s4 = inlined_call_operand.vmem [shape: f32[1,32], index: 4, kind: input, shape index: {}]   ;;  %s1154_s5 = inlined_call_operand.hbm [shape: f32[2,32], index: 5, kind: output, shape index: {}]  }
   0x1   :  { %11 = vsyncpa [#allocation4], 0  ;;  %s981_s18 = smov [#allocation2]  }
   0x2   :  { %s19_s19 = sshll.u32 %s981_s18, 4  ;;  %s20_s19 = int_to_ptr.vmem [resolvable:$true] %s19_s19 }
   0x3   :  { %s945_s20 = scalar_lea.vmem %s20_s19, 5120  ;;  %p950_p1 = scmp.lt.s32.totalorder %s20_s19, %s20_s19 }
   0x4   :  { %p946_p0 = scmp.ne.s32.totalorder %s20_s19, %s945_s20  ;;  %p951_p2 = scmp.lt.s32.totalorder %s945_s20, %s945_s20 }
   0x6   :  { %p952_p3 = por %p951_p2, %p950_p1 }
   0x8   :  { %p953_p4 = pnand %p952_p3, %p946_p0 }
   0xa   :  { %956 = shalt.err (!%p953_p4)
}
   0xb   :  { %s982_s21 = smov 320   ;;  %s983_s22 = smov 20  }
   0xc   :  { %25 = dma.hbm_to_vmem [thread:$0]  %s1150_s1, 5120, %s20_s19, [#allocation3], %s982_s21, %s982_s21, %s983_s22  }
   0xd   :  { %977 = dma.done.wait [#allocation3], 5120  }
   0xe   :  { %978 = vsyncadd [#allocation3], 4294962176  ;;  %v984_v0 = vmov 0   ;;  %v873_v1 = vld [vmem:[#allocation2 + $0x11c] ss:$20 sps:$4 sm:$0xff]   ;;  %v36_v31 = vld [vmem:[%s1149_s0] sm:$0xff] }
   0xf   :  { %331 = vmatprep.mubr.bf16.mxu0 %v984_v0  ;;  %391 = vmatprep.mubr.bf16.mxu1 %v984_v0  ;;  %v875_v2 = vld [vmem:[#allocation2 + $0x118] ss:$20 sps:$4 sm:$0xff]   ;;  %v876_v3 = vld [vmem:[#allocation2 + $0xf4] ss:$20 sps:$4 sm:$0xff]   ;;  %v880_v5 = vld [vmem:[#allocation2 + $0xf0] ss:$20 sps:$4 sm:$0xff]  }
  0x10   :  { %299 = vmatprep.subr.bf16.mxu0 %v873_v1  ;;  %v878_v4 = vld [vmem:[#allocation2 + $0x124] ss:$20 sps:$4 sm:$0xff]   ;;  %v881_v6 = vld [vmem:[#allocation2 + $0x120] ss:$20 sps:$4 sm:$0xff]   ;;  %v884_v8 = vld [vmem:[#allocation2 + $0xfc] ss:$20 sps:$4 sm:$0xff]  }
  0x11   :  { %300 = vmatpush1.bf16.msra.mxu0 %v875_v2  ;;  %v882_v7 = vld [vmem:[#allocation2 + $0xcc] ss:$20 sps:$4 sm:$0xff]   ;;  %359 = vmatprep.subr.bf16.mxu1 %v878_v4  ;;  %v886_v10 = vld [vmem:[#allocation2 + $0xc8] ss:$20 sps:$4 sm:$0xff]   ;;  %v888_v11 = vld [vmem:[#allocation2 + $0xa4] ss:$20 sps:$4 sm:$0xff]  }
  0x12   :  { %301 = vmatprep.subr.bf16.mxu0 %v876_v3  ;;  %360 = vmatpush1.bf16.msra.mxu1 %v881_v6  ;;  %v887_v9 = vld [vmem:[#allocation2 + $0xf8] ss:$20 sps:$4 sm:$0xff]   ;;  %v890_v12 = vld [vmem:[#allocation2 + $0xd4] ss:$20 sps:$4 sm:$0xff]   ;;  %v893_v13 = vld [vmem:[#allocation2 + $0xd0] ss:$20 sps:$4 sm:$0xff]  }
  0x13   :  { %361 = vmatprep.subr.bf16.mxu1 %v884_v8  ;;  %v892_v14 = vld [vmem:[#allocation2 + $0xa0] ss:$20 sps:$4 sm:$0xff]   ;;  %v894_v16 = vld [vmem:[#allocation2 + $0x7c] ss:$20 sps:$4 sm:$0xff]   ;;  %v898_v17 = vld [vmem:[#allocation2 + $0x78] ss:$20 sps:$4 sm:$0xff]  }
  0x14   :  { %v896_v15 = vld [vmem:[#allocation2 + $0xac] ss:$20 sps:$4 sm:$0xff]   ;;  %v899_v18 = vld [vmem:[#allocation2 + $0xa8] ss:$20 sps:$4 sm:$0xff]   ;;  %v902_v19 = vld [vmem:[#allocation2 + $0x84] ss:$20 sps:$4 sm:$0xff]  }
  0x15   :  { %302 = vmatpush1.bf16.msra.mxu0 %v880_v5  ;;  %v900_v20 = vld [vmem:[#allocation2 + $0x54] ss:$20 sps:$4 sm:$0xff]   ;;  %v904_v22 = vld [vmem:[#allocation2 + $0x50] ss:$20 sps:$4 sm:$0xff]   ;;  %v906_v24 = vld [vmem:[#allocation2 + $0x2c] ss:$20 sps:$4 sm:$0xff]  }
  0x16   :  { %303 = vmatprep.subr.bf16.mxu0 %v882_v7  ;;  %362 = vmatpush1.bf16.msra.mxu1 %v887_v9  ;;  %v905_v21 = vld [vmem:[#allocation2 + $0x80] ss:$20 sps:$4 sm:$0xff]   ;;  %v908_v23 = vld [vmem:[#allocation2 + $0x5c] ss:$20 sps:$4 sm:$0xff]   ;;  %v911_v26 = vld [vmem:[#allocation2 + $0x58] ss:$20 sps:$4 sm:$0xff]  }
  0x17   :  { %363 = vmatprep.subr.bf16.mxu1 %v890_v12  ;;  %v910_v25 = vld [vmem:[#allocation2 + $0x28] ss:$20 sps:$4 sm:$0xff]   ;;  %v912_v28 = vld [vmem:[#allocation2 + $0x4] ss:$20 sps:$4 sm:$0xff]   ;;  %v916_v30 = vld [vmem:[#allocation2] ss:$20 sps:$4 sm:$0xff]  }
  0x18   :  { %v914_v27 = vld [vmem:[#allocation2 + $0x34] ss:$20 sps:$4 sm:$0xff]   ;;  %v917_v29 = vld [vmem:[#allocation2 + $0x30] ss:$20 sps:$4 sm:$0xff]   ;;  %v918_v33 = vld [vmem:[#allocation2 + $0xc] ss:$20 sps:$4 sm:$0xff]  }
  0x19   :  { %304 = vmatpush1.bf16.msra.mxu0 %v886_v10  ;;  %v37_v32 = vld [vmem:[%s1149_s0 + $0x8] sm:$0xff]  ;;  %v985_v37 = vmov 0.0   ;;  %v922_v38 = vld [vmem:[#allocation2 + $0x100] ss:$20 sps:$4 sm:$0xff]   ;;  %v39_v40 = vld [vmem:[%s1149_s0 + $0x18] sm:$0xff]  ;;  %v986_v45 = vmov 0.0|0.0  }
  0x1a   :  { %305 = vmatprep.subr.bf16.mxu0 %v888_v11  ;;  %364 = vmatpush1.bf16.msra.mxu1 %v893_v13  ;;  %v920_v34 = vld [vmem:[#allocation2 + $0x8] ss:$20 sps:$4 sm:$0xff]   ;;  %v40_v35 = vpack.c.bf16 %v37_v32, %v36_v31  ;;  %v38_v39 = vld [vmem:[%s1149_s0 + $0x10] sm:$0xff]  ;;  %v923_v42 = vld [vmem:[#allocation2 + $0xd8] ss:$20 sps:$4 sm:$0xff]   ;;  %vm987_vm0 = vmmov 0   ;;  %v568_v13 = vlaneseq }
  0x1b   :  { %365 = vmatprep.subr.bf16.mxu1 %v896_v15  ;;  %v921_v36 = vld [vmem:[#allocation2 + $0x128] ss:$20 sps:$4 sm:$0xff]   ;;  %v41_v41 = vpack.c.bf16 %v39_v40, %v38_v39  ;;  %v924_v43 = vld [vmem:[#allocation2 + $0xb0] ss:$20 sps:$4 sm:$0xff]   ;;  %v926_v46 = vld [vmem:[#allocation2 + $0x60] ss:$20 sps:$4 sm:$0xff]  }
  0x1c   :  { %v925_v44 = vld [vmem:[#allocation2 + $0x88] ss:$20 sps:$4 sm:$0xff]   ;;  %v927_v47 = vld [vmem:[#allocation2 + $0x38] ss:$20 sps:$4 sm:$0xff]   ;;  %v928_v48 = vld [vmem:[#allocation2 + $0x10] ss:$20 sps:$4 sm:$0xff]  }
  0x1d   :  { %306 = vmatpush1.bf16.msra.mxu0 %v892_v14  ;;  %v929_v49 = vld [vmem:[%s1152_s3 + $0x38] sm:$0xff]   ;;  %v930_v50 = vld [vmem:[%s1152_s3 + $0x30] sm:$0xff]   ;;  %v931_v51 = vld [vmem:[%s1152_s3 + $0x28] sm:$0xff]   ;;  %vm481_vm1 = vcmask 1046528   ;;  %vm504_vm5 = vcmask 1045504   ;;  %vm527_vm9 = vcmask 1044480  }
  0x1e   :  { %307 = vmatprep.subr.bf16.mxu0 %v894_v16  ;;  %366 = vmatpush1.bf16.msra.mxu1 %v899_v18  ;;  %v932_v52 = vld [vmem:[%s1152_s3 + $0x20] sm:$0xff]   ;;  %v933_v53 = vld [vmem:[%s1152_s3 + $0x18] sm:$0xff]   ;;  %v934_v54 = vld [vmem:[%s1152_s3 + $0x10] sm:$0xff]   ;;  %vm550_vm11 = vcmask 1043456   ;;  %vm605_vm14 = vcmask 1040384   ;;  %s989_s1 = smov [#allocation5]  }
  0x1f   :  { %367 = vmatprep.subr.bf16.mxu1 %v902_v19  ;;  %v935_v55 = vld [vmem:[%s1152_s3 + $0x8] sm:$0xff]   ;;  %v936_v56 = vld [vmem:[%s1152_s3] sm:$0xff]   ;;  %s737_s25 = sshll.u32 %s989_s1, 4  ;;  %vm729_vm15 = vcmask 254976   ;;  %s738_s25 = int_to_ptr.vmem [resolvable:$true] %s737_s25 }
  0x20   :  { %p962_p6 = scmp.lt.s32.totalorder %s738_s25, %s738_s25 }
  0x21   :  { %308 = vmatpush1.bf16.msra.mxu0 %v898_v17  ;;  %v572_v17 = vand.u32 127, %v568_v13 }
  0x22   :  { %309 = vmatprep.subr.bf16.mxu0 %v900_v20  ;;  %368 = vmatpush1.bf16.msra.mxu1 %v905_v21 }
  0x23   :  { %369 = vmatprep.subr.bf16.mxu1 %v908_v23  ;;  %vm574_vm2 = vcmp.lt.s32.totalorder %v572_v17, 32  ;;  %vm577_vm3 = vcmp.ge.s32.totalorder %v572_v17, 32  ;;  %vm578_vm4 = vcmp.lt.s32.totalorder %v572_v17, 64  ;;  %vm581_vm6 = vcmp.ge.s32.totalorder %v572_v17, 64 }
  0x24   :  { %vm1108_vm7 = vmand %vm577_vm3, %vm578_vm4  ;;  %vm582_vm8 = vcmp.lt.s32.totalorder %v572_v17, 96 }
  0x25   :  { %310 = vmatpush1.bf16.msra.mxu0 %v904_v22  ;;  %vm583_vm10 = vmand %vm581_vm6, %vm582_vm8 }
  0x26   :  { %311 = vmatprep.subr.bf16.mxu0 %v906_v24  ;;  %370 = vmatpush1.bf16.msra.mxu1 %v911_v26 }
  0x27   :  { %371 = vmatprep.subr.bf16.mxu1 %v914_v27  ;;  %v988_v27 = vmov 16  }
  0x29   :  { %312 = vmatpush1.bf16.msra.mxu0 %v910_v25 }
  0x2a   :  { %313 = vmatprep.subr.bf16.mxu0 %v912_v28  ;;  %372 = vmatpush1.bf16.msra.mxu1 %v917_v29  ;;  %v576_v28 = vsel %vm574_vm2, 14, %v988_v27 }
  0x2b   :  { %373 = vmatprep.subr.bf16.mxu1 %v918_v33 }
  0x2d   :  { %314 = vmatpush1.bf16.msra.mxu0 %v916_v30 }
  0x2e   :  { %816 = vmatprep.subr.bf16.mxu0 %v985_v37  ;;  %374 = vmatpush1.bf16.msra.mxu1 %v920_v34 }
  0x2f   :  { %844 = vmatprep.subr.bf16.mxu1 %v985_v37 }
  0x30   :  { %332 = vmatmul.mubr.bf16.vlgmr.msra.gmra.mxu0 %v40_v35 }
  0x31   :  { %817 = vmatpush3.bf16.msra.mxu0 %v921_v36  ;;  %341 = vmatprep.mubr.bf16.mxu0 %v984_v0 }
  0x32   :  { %818 = vmatprep.subr.bf16.mxu0 %v985_v37  ;;  %392 = vmatmul.mubr.bf16.vlgmr.msra.gmra.mxu1 %v40_v35 }
  0x33   :  { %401 = vmatprep.mubr.bf16.mxu1 %v984_v0  ;;  %845 = vmatpush3.bf16.msra.mxu1 %v929_v49 }
  0x34   :  { %846 = vmatprep.subr.bf16.mxu1 %v985_v37 }
  0x35   :  { %819 = vmatpush3.bf16.msra.mxu0 %v922_v38 }
  0x36   :  { %820 = vmatprep.subr.bf16.mxu0 %v985_v37 }
  0x37   :  { %847 = vmatpush3.bf16.msra.mxu1 %v930_v50 }
  0x38   :  { %342 = vmatmul.mubr.bf16.gmra.mxu0 %v41_v41  ;;  %848 = vmatprep.subr.bf16.mxu1 %v985_v37 }
  0x39   :  { %821 = vmatpush3.bf16.msra.mxu0 %v923_v42  ;;  %351 = vmatprep.mubr.bf16.mxu0 %v984_v0 }
  0x3a   :  { %822 = vmatprep.subr.bf16.mxu0 %v985_v37  ;;  %402 = vmatmul.mubr.bf16.gmra.mxu1 %v41_v41 }
  0x3b   :  { %411 = vmatprep.mubr.bf16.mxu1 %v984_v0  ;;  %849 = vmatpush3.bf16.msra.mxu1 %v931_v51 }
  0x3c   :  { %850 = vmatprep.subr.bf16.mxu1 %v985_v37 }
  0x3d   :  { %823 = vmatpush3.bf16.msra.mxu0 %v924_v43 }
  0x3e   :  { %824 = vmatprep.subr.bf16.mxu0 %v985_v37 }
  0x3f   :  { %851 = vmatpush3.bf16.msra.mxu1 %v932_v52 }
  0x40   :  { %352 = vmatmul.mubr.bf16.gmra.mxu0 %v986_v45  ;;  %852 = vmatprep.subr.bf16.mxu1 %v985_v37 }
  0x41   :  { %825 = vmatpush3.bf16.msra.mxu0 %v925_v44  ;;  %832 = vmatprep.mubr.msk.bf16.mxu0 %vm987_vm0, %v985_v37 }
  0x42   :  { %826 = vmatprep.subr.bf16.mxu0 %v985_v37  ;;  %412 = vmatmul.mubr.bf16.gmra.mxu1 %v986_v45 }
  0x43   :  { %860 = vmatprep.mubr.msk.bf16.mxu1 %vm987_vm0, %v985_v37  ;;  %853 = vmatpush3.bf16.msra.mxu1 %v933_v53 }
  0x44   :  { %854 = vmatprep.subr.bf16.mxu1 %v985_v37 }
  0x45   :  { %827 = vmatpush3.bf16.msra.mxu0 %v926_v46 }
  0x46   :  { %828 = vmatprep.subr.bf16.mxu0 %v985_v37 }
  0x47   :  { %855 = vmatpush3.bf16.msra.mxu1 %v934_v54 }
  0x48   :  { %856 = vmatprep.subr.bf16.mxu1 %v985_v37 }
  0x49   :  { %829 = vmatpush3.bf16.msra.mxu0 %v927_v47 }
  0x4a   :  { %830 = vmatprep.subr.bf16.mxu0 %v985_v37 }
  0x4b   :  { %857 = vmatpush3.bf16.msra.mxu1 %v935_v55 }
  0x4c   :  { %858 = vmatprep.subr.bf16.mxu1 %v985_v37 }
  0x4d   :  { %831 = vmatpush3.bf16.msra.mxu0 %v928_v48 }
  0x4f   :  { %859 = vmatpush3.bf16.msra.mxu1 %v936_v56 }
  0x50   :  { %833 = vmatmul.mubr.bf16.vlgmr.msra.gmra.mxu0 %v40_v35 }
  0x51   :  { %836 = vmatprep.mubr.msk.bf16.mxu0 %vm987_vm0, %v985_v37 }
  0x58   :  { %837 = vmatmul.mubr.bf16.gmra.mxu0 %v41_v41  ;;  %v580_v41 = vsel %vm1108_vm7, 13, %v576_v28 }
  0x59   :  { %840 = vmatprep.mubr.msk.bf16.mxu0 %vm987_vm0, %v985_v37  ;;  %v584_v51 = vsel %vm583_vm10, 12, %v580_v41 }
  0x60   :  { %841 = vmatmul.mubr.bf16.gmra.mxu0 %v986_v45  ;;  %v569_v45 = vshrl.u32 %v568_v13, 7 }
  0x62   :  { %v570_v53 = vadd.s32 8, %v569_v45  ;;  %vm585_vm12 = vcmp.lt.s32.totalorder %v569_v45, %v584_v51 }
  0x64   :  { %vm586_vm13 = vcmp.lt.s32.totalorder %v570_v53, %v584_v51 }
  0xf0   :  { %v333_v57 = vpop.f32.mrf.mxu0 }
  0xf2   :  { %v335_v58 = vpop.f32.mrf.mxu0  ;;  %v393_v59 = vpop.f32.mrf.mxu1 }
  0xf3   :  { %v482_v20 = vrot.slane %v335_v58, 1  ;;  %v505_v22 = vrot.slane %v393_v59, 2 }
  0xf4   :  { %v337_v60 = vpop.f32.mrf.mxu0  ;;  %v395_v61 = vpop.f32.mrf.mxu1 }
  0xf5   :  { %v528_v30 = vrot.slane %v395_v61, 3 }
  0xf6   :  { %v339_v62 = vpop.f32.mrf.mxu0  ;;  %v397_v63 = vpop.f32.mrf.mxu1 }
  0xf7   :  { %v483_v18 = vrot.slane %v339_v62, 1  ;;  %v506_v24 = vrot.slane %v397_v63, 2 }
  0xf8   :  { %v1085_v0 = vpop.f32.mrf.mxu0  ;;  %v1087_v1 = vpop.f32.mrf.mxu1 }
  0xf9   :  { %v484_v23 = vsel %vm481_vm1, %v482_v20, %v483_v18  ;;  %v529_v31 = vrot.slane %v1087_v1, 3  ;;  %v507_v34 = vsel %vm504_vm5, %v505_v22, %v506_v24 }
  0xfa   :  { %v345_v2 = vpop.f32.mrf.mxu0  ;;  %v1089_v3 = vpop.f32.mrf.mxu1  ;;  %v495_v29 = vadd.f32 %v484_v23, %v333_v57 }
  0xfb   :  { %v485_v21 = vrot.slane %v345_v2, 1  ;;  %v508_v26 = vrot.slane %v1089_v3, 2  ;;  %v530_v43 = vsel %vm527_vm9, %v528_v30, %v529_v31 }
  0xfc   :  { %v1091_v4 = vpop.f32.mrf.mxu0  ;;  %v1093_v5 = vpop.f32.mrf.mxu1  ;;  %v518_v42 = vadd.f32 %v507_v34, %v495_v29 }
  0xfd   :  { %v486_v25 = vsel %vm481_vm1, %v483_v18, %v485_v21  ;;  %v509_v38 = vsel %vm504_vm5, %v506_v24, %v508_v26  ;;  %v531_v39 = vrot.slane %v1093_v5, 3 }
  0xfe   :  { %v349_v6 = vpop.f32.mrf.mxu0  ;;  %v1095_v7 = vpop.f32.mrf.mxu1  ;;  %v496_v36 = vadd.f32 %v486_v25, %v337_v60  ;;  %v541_v58 = vadd.f32 %v530_v43, %v518_v42 }
  0xff   :  { %v487_v35 = vrot.slane %v349_v6, 1  ;;  %v510_v47 = vrot.slane %v1095_v7, 2  ;;  %v532_v54 = vsel %vm527_vm9, %v529_v31, %v531_v39 }
 0x100   :  { %v353_v8 = vpop.f32.mrf.mxu0  ;;  %v1097_v9 = vpop.f32.mrf.mxu1  ;;  %v519_v50 = vadd.f32 %v509_v38, %v496_v36 }
 0x101   :  { %v488_v46 = vsel %vm481_vm1, %v485_v21, %v487_v35  ;;  %v511_v61 = vsel %vm504_vm5, %v508_v26, %v510_v47  ;;  %v533_v62 = vrot.slane %v1097_v9, 3 }
 0x102   :  { %v354_v10 = vpop.f32.mrf.mxu0  ;;  %v1099_v11 = vpop.f32.mrf.mxu1  ;;  %v497_v59 = vadd.f32 %v488_v46, %v1085_v0  ;;  %v542_v1 = vadd.f32 %v532_v54, %v519_v50 }
 0x103   :  { %v489_v40 = vrot.slane %v354_v10, 1  ;;  %v512_v56 = vrot.slane %v1099_v11, 2 }
 0x104   :  { %v356_v12 = vpop.f32.mrf.mxu0  ;;  %v1101_v14 = vpop.f32.mrf.mxu1  ;;  %v520_v0 = vadd.f32 %v511_v61, %v497_v59 }
 0x105   :  { %v490_v55 = vsel %vm481_vm1, %v487_v35, %v489_v40  ;;  %v513_v6 = vsel %vm504_vm5, %v510_v47, %v512_v56  ;;  %v535_v7 = vrot.slane %v1101_v14, 3  ;;  %v534_v12 = vsel %vm527_vm9, %v531_v39, %v533_v62 }
 0x106   :  { %v357_v15 = vpop.f32.mrf.mxu0  ;;  %v417_v16 = vpop.f32.mrf.mxu1  ;;  %v498_v2 = vadd.f32 %v490_v55, %v1091_v4 }
 0x107   :  { %v536_v17 = vsel %vm527_vm9, %v533_v62, %v535_v7 }
 0x108   :  { %v418_v19 = vpop.f32.mrf.mxu1  ;;  %v521_v13 = vadd.f32 %v513_v6, %v498_v2 }
 0x109   :  { %v543_v19 = vadd.f32 %v534_v12, %v520_v0 }
 0x10a   :  { %v544_v23 = vadd.f32 %v536_v17, %v521_v13 }
 0x110   :  { %v454_v32 = vpop.f32.mrf.mxu0 }
 0x111   :  { %v551_v48 = vrot.slane %v454_v32, 4 }
 0x112   :  { %v834_v37 = vpop.f32.mrf.mxu0 }
 0x114   :  { %v457_v44 = vpop.f32.mrf.mxu0 }
 0x115   :  { %v552_v49 = vrot.slane %v457_v44, 4  ;;  %v786_v44 = vld [vmem:[%s1151_s2] ss:$0 sm:$0xff]  ;;  %s957_s2 = scalar_lea.vmem %s738_s25, 32 }
 0x116   :  { %v835_v52 = vpop.f32.mrf.mxu0  ;;  %p958_p5 = scmp.ne.s32.totalorder %s738_s25, %s957_s2  ;;  %p963_p7 = scmp.lt.s32.totalorder %s957_s2, %s957_s2 }
 0x117   :  { %v553_v57 = vsel %vm550_vm11, %v551_v48, %v552_v49 }
 0x118   :  { %v462_v60 = vpop.f32.mrf.mxu0  ;;  %v564_v3 = vadd.f32 %v553_v57, %v541_v58  ;;  %p964_p8 = por %p963_p7, %p962_p6 }
 0x119   :  { %v554_v63 = vrot.slane %v462_v60, 4 }
 0x11a   :  { %v838_v5 = vpop.f32.mrf.mxu0  ;;  %v587_v15 = vsel %vm585_vm12, %v564_v3, -1e+30  ;;  %p965_p9 = pnand %p964_p8, %p958_p5 }
 0x11b   :  { %v555_v8 = vsel %vm550_vm11, %v552_v49, %v554_v63  ;;  %v787_v49 = vld [vmem:[%s1153_s4] ss:$0 sm:$0xff] }
 0x11c   :  { %v565_v10 = vadd.f32 %v555_v8, %v542_v1  ;;  %v465_v11 = vpop.f32.mrf.mxu0 }
 0x11d   :  { %v556_v9 = vrot.slane %v465_v11, 4 }
 0x11e   :  { %v588_v4 = vsel %vm586_vm13, %v565_v10, -1e+30  ;;  %v839_v16 = vpop.f32.mrf.mxu0 }
 0x11f   :  { %v589_v18 = vmax.f32 %v587_v15, %v588_v4  ;;  %v557_v14 = vsel %vm550_vm11, %v554_v63, %v556_v9 }
 0x120   :  { %v470_v20 = vpop.f32.mrf.mxu0  ;;  %v566_v24 = vadd.f32 %v557_v14, %v543_v19 }
 0x121   :  { %v590_v21 = vrot.slane %v589_v18, 4  ;;  %v558_v22 = vrot.slane %v470_v20, 4 }
 0x122   :  { %v842_v25 = vpop.f32.mrf.mxu0  ;;  %v596_v30 = vsel %vm585_vm12, %v566_v24, -1e+30 }
 0x123   :  { %v591_v26 = vmax.f32 %v589_v18, %v590_v21  ;;  %v559_v27 = vsel %vm550_vm11, %v556_v9, %v558_v22 }
 0x124   :  { %v567_v28 = vadd.f32 %v559_v27, %v544_v23  ;;  %v473_v29 = vpop.f32.mrf.mxu0 }
 0x125   :  { %v592_v33 = vrot.slane %v591_v26, 2 }
 0x126   :  { %v597_v31 = vsel %vm586_vm13, %v567_v28, -1e+30  ;;  %v843_v32 = vpop.f32.mrf.mxu0 }
 0x127   :  { %v598_v34 = vmax.f32 %v596_v30, %v597_v31  ;;  %v593_v36 = vmax.f32 %v591_v26, %v592_v33 }
 0x129   :  { %v599_v35 = vrot.slane %v598_v34, 4  ;;  %v594_v39 = vrot.slane %v593_v36, 1 }
 0x12b   :  { %v600_v37 = vmax.f32 %v598_v34, %v599_v35  ;;  %v595_v42 = vmax.f32 %v593_v36, %v594_v39 }
 0x12d   :  { %v601_v38 = vrot.slane %v600_v37, 2 }
 0x12f   :  { %v602_v40 = vmax.f32 %v600_v37, %v601_v38 }
 0x131   :  { %v603_v41 = vrot.slane %v602_v40, 1 }
 0x133   :  { %v604_v43 = vmax.f32 %v602_v40, %v603_v41 }
 0x135   :  { %v606_v45 = vsel %vm605_vm14, %v595_v42, %v604_v43 }
 0x136   :  { %v614_v46 = vadd.f32 %v786_v44, %v606_v45 }
 0x138   :  { %v615_v47 = vmax.f32 %v614_v46, 0.0 }
 0x13a   :  { %v616_v48 = vpack.c.bf16 %v615_v47, %v615_v47 }
 0x13c   :  { %861 = vmatmul.mubr.bf16.vlgmr.msra.gmra.mxu1 %v616_v48 }
 0x1fc   :  { %v722_v50 = vpop.f32.mrf.mxu1 }
 0x1fd   :  { %v723_v51 = vadd.f32 %v787_v49, %v722_v50 }
 0x1fe   :  { %v862_v52 = vpop.f32.mrf.mxu1 }
 0x1ff   :  { %v728_v53 = vmax.f32 %v723_v51, 0.0 }
 0x200   :  { %v725_v54 = vpop.f32.mrf.mxu1 }
 0x201   :  { %730 = vst.msk [vmem:[#allocation5] sm:$0x3] %vm729_vm15, %v728_v53 }
 0x202   :  { %v863_v55 = vpop.f32.mrf.mxu1 }
 0x203   :  { %968 = shalt.err (!%p965_p9)
}
 0x204   :  { %740 = dma.vmem_to_hbm [thread:$0]  %s738_s25, 32, %s1154_s5, [#allocation4]  }
 0x205   :  { %979 = dma.done.wait [#allocation4], 32  }
 0x206   :  { %980 = vsyncadd [#allocation4], 4294967264 }
 0x207   :  { %744 = vsyncpa [#allocation3], 1 }
 0x208   :  { %745 = vsyncpa [#allocation4], 1 }

</bundles_post_ra>
